<compile_context>
chip_gen: v7x
topology: tpu7x:2x2x1
jax: 0.10.0
libtpu: 0.0.40
codegen_flags: <defaults>
</compile_context>

<pallas_src>
import math
import functools

import jax
import jax.numpy as jnp
from jax import lax
from jax.experimental import pallas as pl
from jax.experimental.pallas import tpu as pltpu

_LANES = 128
_SUBLANES = 8
_CHUNK_ROWS = 512            # inner-loop slice; multiple of 8/16/32 (all dtype min tiles)
_MAX_BLOCK_ROWS = 4096       # f32: 2 MiB per input per buffer -> 8 MiB double-buffered


def _round_up(x, m):
    return ((x + m - 1) // m) * m


# --------------------------------------------------------------------------
# Pallas kernels
# --------------------------------------------------------------------------
def _reduce_kernel(sr_ref, hr_ref, o_ref, acc_ref, *, use_l2, rows, block_rows,
                   blocks_per_half, scale, needs_mask):
    """Fused |sr-hr| / (sr-hr)^2 + sum over the whole tensor.

    Grid: (num_halves ["parallel"], blocks_per_half ["arbitrary"]).
    sr_ref/hr_ref: (block_rows, 128) tile of the flattened inputs.
    o_ref:         (1, 8, 128) partial sums for this half (written on last step).
    acc_ref:       (8, 128) f32 running partials (resident across the inner axis).
    """
    j = pl.program_id(1)

    @pl.when(j == 0)
    def _init():
        acc_ref[...] = jnp.zeros_like(acc_ref)

    block_start = (pl.program_id(0) * blocks_per_half + j) * block_rows
    valid_rows = rows - block_start          # may exceed block_rows or be <= 0
    nchunks = block_rows // _CHUNK_ROWS

    def _chunk(c, carry):
        r0 = pl.multiple_of(c * _CHUNK_ROWS, _CHUNK_ROWS)
        d = (sr_ref[pl.ds(r0, _CHUNK_ROWS), :].astype(jnp.float32)
             - hr_ref[pl.ds(r0, _CHUNK_ROWS), :].astype(jnp.float32))
        v = d * d if use_l2 else jnp.abs(d)
        if needs_mask:
            row = lax.broadcasted_iota(jnp.int32, (_CHUNK_ROWS, _LANES), 0) + r0
            v = jnp.where(row < valid_rows, v, 0.0)
        # vreg-wise accumulate; no cross-lane/cross-sublane reduce in the hot loop
        acc_ref[...] += v.reshape(_CHUNK_ROWS // _SUBLANES, _SUBLANES, _LANES).sum(axis=0)
        return carry

    lax.fori_loop(0, nchunks, _chunk, 0)

    @pl.when(j == pl.num_programs(1) - 1)
    def _finalize():
        # loss_weight (and 1/n for 'mean') folded in here as a compile-time constant.
        o_ref[...] = (acc_ref[...] * scale).reshape(1, _SUBLANES, _LANES)


def _elementwise_kernel(sr_ref, hr_ref, o_ref, *, use_l2, weight):
    """reduction='none': per-element loss tile (loss_weight folded in)."""
    d = sr_ref[...].astype(jnp.float32) - hr_ref[...].astype(jnp.float32)
    v = d * d if use_l2 else jnp.abs(d)
    o_ref[...] = (v * weight).astype(o_ref.dtype)


# --------------------------------------------------------------------------
# Wrappers
# --------------------------------------------------------------------------
def _as_lane_matrix(x):
    """View x as (rows, 128).  Only pads (a copy) when numel % 128 != 0 (rare)."""
    n = math.prod(x.shape)
    rows = pl.cdiv(max(n, 1), _LANES)
    flat = x.reshape(-1)
    pad = rows * _LANES - n
    if pad:
        flat = jnp.pad(flat, (0, pad))   # zeros contribute 0 to both L1 and L2 sums
    return flat.reshape(rows, _LANES), n, rows


def pixel_loss(sr, hr, loss_weight=1.0, reduction='mean', criterion='l1'):
    if sr.shape != hr.shape:
        raise ValueError(f'Shape mismatch: {sr.shape} vs {hr.shape}')
    if criterion not in ('l1', 'l2'):
        raise ValueError(f'Unsupported criterion: {criterion}')
    use_l2 = criterion == 'l2'

    sr2, n, rows = _as_lane_matrix(sr)
    hr2, _, _ = _as_lane_matrix(hr)

    # Block rows: multiple of _CHUNK_ROWS (hence of 8/16/32 sublane tiles), capped.
    tr = min(_MAX_BLOCK_ROWS, _round_up(rows, _CHUNK_ROWS))

    if reduction in ('mean', 'sum'):
        total_blocks = pl.cdiv(rows, tr)
        # 2-way split of the reduction for v7x's two TensorCores; only when the
        # (at most one) duplicated overhang block is negligible / nonexistent.
        if total_blocks >= 2 and (total_blocks % 2 == 0 or total_blocks >= 9):
            num_p = 2
        else:
            num_p = 1
        bph = pl.cdiv(total_blocks, num_p)
        needs_mask = (rows != total_blocks * tr) or (num_p * bph != total_blocks)
        if num_p * bph == total_blocks:
            idx = lambda p, j: (p * bph + j, 0)
        else:
            last_b = total_blocks - 1
            idx = lambda p, j: (jnp.minimum(p * bph + j, last_b), 0)

        scale = float(loss_weight) / n if reduction == 'mean' else float(loss_weight)

        partials = pl.pallas_call(
            functools.partial(_reduce_kernel, use_l2=use_l2, rows=rows,
                              block_rows=tr, blocks_per_half=bph,
                              scale=scale, needs_mask=needs_mask),
            out_shape=jax.ShapeDtypeStruct((num_p, _SUBLANES, _LANES), jnp.float32),
            grid=(num_p, bph),
            in_specs=[pl.BlockSpec((tr, _LANES), idx),
                      pl.BlockSpec((tr, _LANES), idx)],
            out_specs=pl.BlockSpec((1, _SUBLANES, _LANES), lambda p, j: (p, 0, 0)),
            scratch_shapes=[pltpu.VMEM((_SUBLANES, _LANES), jnp.float32)],
            compiler_params=pltpu.CompilerParams(
                dimension_semantics=("parallel", "arbitrary"),
                vmem_limit_bytes=32 * 1024 * 1024),
        )(sr2, hr2)
        # Tiny final reduce (<= 2*8*128 elems); weight / 1/n already folded in-kernel.
        return jnp.sum(partials)

    if reduction == 'none':
        grid = (pl.cdiv(rows, tr),)
        out = pl.pallas_call(
            functools.partial(_elementwise_kernel, use_l2=use_l2,
                              weight=float(loss_weight)),
            out_shape=jax.ShapeDtypeStruct((rows, _LANES), sr.dtype),
            grid=grid,
            in_specs=[pl.BlockSpec((tr, _LANES), lambda i: (i, 0)),
                      pl.BlockSpec((tr, _LANES), lambda i: (i, 0))],
            out_specs=pl.BlockSpec((tr, _LANES), lambda i: (i, 0)),
            compiler_params=pltpu.CompilerParams(
                dimension_semantics=("parallel",),
                vmem_limit_bytes=32 * 1024 * 1024),
        )(sr2, hr2)
        if rows * _LANES != n:          # only when the input was ragged (rare)
            out = out.reshape(-1)[:n]
        return out.reshape(sr.shape)

    raise ValueError(f'Unsupported reduction: {reduction}')


class PixelLoss:
    """Pixel-wise loss (L1 and L2) — Pallas TPU port of the PyTorch module."""

    def __init__(self, loss_weight=1.0, reduction='mean', criterion='l1'):
        if criterion not in ('l1', 'l2'):
            raise ValueError(f'Unsupported criterion: {criterion}')
        self.loss_weight = loss_weight
        self.reduction = reduction
        self.criterion = criterion

    def __call__(self, sr, hr):
        return pixel_loss(sr, hr, self.loss_weight, self.reduction, self.criterion)


# --------------------------------------------------------------------------
# Demo
# --------------------------------------------------------------------------
if __name__ == "__main__":
    key = jax.random.PRNGKey(0)
    k1, k2 = jax.random.split(key)
    sr = jax.random.uniform(k1, (2, 4, 16, 16), dtype=jnp.float32)
    hr = jax.random.uniform(k2, (2, 4, 16, 16), dtype=jnp.float32)

    out_l1_mean = jax.block_until_ready(
        PixelLoss(loss_weight=1.0, reduction='mean', criterion='l1')(sr, hr))
    out_l2_mean = jax.block_until_ready(
        PixelLoss(loss_weight=0.5, reduction='mean', criterion='l2')(sr, hr))
    out_l1_sum = jax.block_until_ready(
        PixelLoss(loss_weight=1.0, reduction='sum', criterion='l1')(sr, hr))
    out_l2_none = jax.block_until_ready(
        PixelLoss(loss_weight=1.0, reduction='none', criterion='l2')(sr, hr))

    # Pure-JAX references (same math as torch L1Loss / MSELoss)
    ref_l1_mean = jnp.mean(jnp.abs(sr - hr))
    ref_l2_mean = 0.5 * jnp.mean((sr - hr) ** 2)
    ref_l1_sum = jnp.sum(jnp.abs(sr - hr))
    ref_l2_none = (sr - hr) ** 2

    assert abs(float(out_l1_mean) - float(ref_l1_mean)) < 1e-5
    assert abs(float(out_l2_mean) - float(ref_l2_mean)) < 1e-6
    assert abs(float(out_l1_sum) - float(ref_l1_sum)) < 1e-3
    assert out_l2_none.shape == sr.shape and out_l2_none.dtype == sr.dtype
    assert float(jnp.max(jnp.abs(out_l2_none - ref_l2_none))) < 1e-6

    print("KERNEL_OK")
</pallas_src>

<mosaic_0001>
module attributes {stable_mosaic.version = 11 : i64} {
  func.func @_reduce_kernel(%arg0: i32, %arg1: i32, %arg2: memref<512x128xf32, #tpu.memory_space<vmem>>, %arg3: memref<512x128xf32, #tpu.memory_space<vmem>>, %arg4: memref<1x8x128xf32, #tpu.memory_space<vmem>>, %arg5: memref<8x128xf32, #tpu.memory_space<vmem>>) attributes {dimension_semantics = [#tpu.dimension_semantics<parallel>, #tpu.dimension_semantics<arbitrary>], iteration_bounds = array<i64: 1, 1>, scalar_prefetch = 0 : i64, scratch_operands = 1 : i64, tpu.core_type = #tpu.core_type<tc>, window_params = [{transform_indices = @transform_0, window_bounds = array<i64: 512, 128>}, {transform_indices = @transform_1, window_bounds = array<i64: 512, 128>}, {transform_indices = @transform_2, window_bounds = array<i64: 1, 8, 128>}]} {
    %c0_i32 = arith.constant 0 : i32
    %0 = arith.cmpi eq, %arg1, %c0_i32 : i32
    %1 = arith.extui %0 : i1 to i32
    %c0_i32_0 = arith.constant 0 : i32
    %2 = arith.cmpi ne, %1, %c0_i32_0 : i32
    scf.if %2 {
      %cst_12 = arith.constant 0.000000e+00 : f32
      %30 = vector.broadcast %cst_12 : f32 to vector<8x128xf32>
      %c0_13 = arith.constant 0 : index
      %c0_14 = arith.constant 0 : index
      %31 = vector.load %arg5[%c0_13, %c0_14] : memref<8x128xf32, #tpu.memory_space<vmem>>, vector<8x128xf32>
      tpu.vector_store %arg5[%c0_13, %c0_14], %30 {strides = array<i32>} : memref<8x128xf32, #tpu.memory_space<vmem>>, vector<8x128xf32>,
    } else {
    }
    %c1_i32 = arith.constant 1 : i32
    %3 = arith.muli %arg0, %c1_i32 : i32
    %4 = arith.addi %3, %arg1 : i32
    %c512_i32 = arith.constant 512 : i32
    %5 = arith.muli %4, %c512_i32 : i32
    %c16_i32 = arith.constant 16 : i32
    %6 = arith.subi %c16_i32, %5 : i32
    %c0_i32_1 = arith.constant 0 : i32
    %c512_i32_2 = arith.constant 512 : i32
    %7 = arith.muli %c0_i32_1, %c512_i32_2 : i32
    %8 = tpu.assume_multiple %7, 512 : i32
    %9 = arith.index_cast %8 : i32 to index
    %c0 = arith.constant 0 : index
    %10 = vector.load %arg2[%9, %c0] : memref<512x128xf32, #tpu.memory_space<vmem>>, vector<512x128xf32>
    %11 = arith.index_cast %8 : i32 to index
    %c0_3 = arith.constant 0 : index
    %12 = vector.load %arg3[%11, %c0_3] : memref<512x128xf32, #tpu.memory_space<vmem>>, vector<512x128xf32>
    %13 = arith.subf %10, %12 : vector<512x128xf32>
    %14 = math.absf %13 : vector<512x128xf32>
    %15 = tpu.iota {dimensions = array<i32: 0>} : vector<512x128xi32>
    %16 = vector.broadcast %8 : i32 to vector<512x128xi32>
    %17 = arith.addi %15, %16 : vector<512x128xi32>
    %18 = vector.broadcast %6 : i32 to vector<512x128xi32>
    %19 = arith.cmpi slt, %17, %18 : vector<512x128xi32>
    %cst = arith.constant 0.000000e+00 : f32
    %20 = vector.broadcast %cst : f32 to vector<512x128xf32>
    %21 = arith.select %19, %14, %20 : vector<512x128xi1>, vector<512x128xf32>
    %c0_4 = arith.constant 0 : index
    %c0_5 = arith.constant 0 : index
    %22 = vector.load %arg5[%c0_4, %c0_5] : memref<8x128xf32, #tpu.memory_space<vmem>>, vector<8x128xf32>
    %23 = vector.shape_cast %21 : vector<512x128xf32> to vector<64x8x128xf32>
    %cst_6 = arith.constant dense<0.000000e+00> : vector<8x128xf32>
    %24 = vector.multi_reduction <add>, %23, %cst_6 [0] : vector<64x8x128xf32> to vector<8x128xf32>
    %25 = arith.addf %22, %24 : vector<8x128xf32>
    %c0_7 = arith.constant 0 : index
    %c0_8 = arith.constant 0 : index
    %26 = vector.load %arg5[%c0_7, %c0_8] : memref<8x128xf32, #tpu.memory_space<vmem>>, vector<8x128xf32>
    tpu.vector_store %arg5[%c0_7, %c0_8], %25 {strides = array<i32>} : memref<8x128xf32, #tpu.memory_space<vmem>>, vector<8x128xf32>,
    %c1_i32_9 = arith.constant 1 : i32
    %c0_i32_10 = arith.constant 0 : i32
    %27 = arith.cmpi eq, %arg1, %c0_i32_10 : i32
    %28 = arith.extui %27 : i1 to i32
    %c0_i32_11 = arith.constant 0 : i32
    %29 = arith.cmpi ne, %28, %c0_i32_11 : i32
    scf.if %29 {
      %c0_12 = arith.constant 0 : index
      %c0_13 = arith.constant 0 : index
      %30 = vector.load %arg5[%c0_12, %c0_13] : memref<8x128xf32, #tpu.memory_space<vmem>>, vector<8x128xf32>
      %cst_14 = arith.constant 4.8828125E-4 : f32
      %31 = vector.broadcast %cst_14 : f32 to vector<8x128xf32>
      %32 = arith.mulf %30, %31 : vector<8x128xf32>
      %33 = vector.shape_cast %32 : vector<8x128xf32> to vector<1x8x128xf32>
      %c0_15 = arith.constant 0 : index
      %c0_16 = arith.constant 0 : index
      %c0_17 = arith.constant 0 : index
      %34 = vector.load %arg4[%c0_15, %c0_16, %c0_17] : memref<1x8x128xf32, #tpu.memory_space<vmem>>, vector<1x8x128xf32>
      tpu.vector_store %arg4[%c0_15, %c0_16, %c0_17], %33 {strides = array<i32>} : memref<1x8x128xf32, #tpu.memory_space<vmem>>, vector<1x8x128xf32>,
    } else {
    }
    return
  }
  func.func @transform_0(%arg0: i32, %arg1: i32) -> (i32, i32) {
    %c1_i32 = arith.constant 1 : i32
    %0 = arith.muli %arg0, %c1_i32 : i32
    %1 = arith.addi %0, %arg1 : i32
    %c0_i32 = arith.constant 0 : i32
    %c0_i32_0 = arith.constant 0 : i32
    return %1, %c0_i32 : i32, i32
  }
  func.func @transform_1(%arg0: i32, %arg1: i32) -> (i32, i32) {
    %c1_i32 = arith.constant 1 : i32
    %0 = arith.muli %arg0, %c1_i32 : i32
    %1 = arith.addi %0, %arg1 : i32
    %c0_i32 = arith.constant 0 : i32
    %c0_i32_0 = arith.constant 0 : i32
    return %1, %c0_i32 : i32, i32
  }
  func.func @transform_2(%arg0: i32, %arg1: i32) -> (i32, i32, i32) {
    %c0_i32 = arith.constant 0 : i32
    %c0_i32_0 = arith.constant 0 : i32
    %c0_i32_1 = arith.constant 0 : i32
    return %arg0, %c0_i32, %c0_i32_0 : i32, i32, i32
  }
}

</mosaic_0001>

<bundles_post_ra>
// kernel: tpu_custom_call.1
= control target key start
LH: loop header
LB: loop body
LE: loop exit
PB: predicated region body
PF: predicated region fallthrough
CT: control target
= control target key end

     0   :  { %7 = vsyncpa [#allocation4], 0  ;;  %s808_s0 = inlined_call_operand.hbm [shape: f32[16,128], index: 0, kind: input, shape index: {}]   ;;  %s809_s1 = inlined_call_operand.hbm [shape: f32[16,128], index: 1, kind: input, shape index: {}]   ;;  %s810_s2 = inlined_call_operand.hbm [shape: f32[1,8,128], index: 2, kind: output, shape index: {}]  }
   0x1   :  { %8 = vsyncpa [#allocation7], 0 }
   0x2   :  { %9 = vsyncpa [#allocation5], 0 }
   0x3   :  { %18 = vsyncadd [#allocation4], 7936  ;;  %s752_s9 = smov [#allocation3]   ;;  %s680_s13 = scalar_lea.hbm %s808_s0, 256 }
   0x4   :  { %s23_s10 = sshll.u32 %s752_s9, 4  ;;  %p681_p0 = scmp.ne.s32.totalorder %s808_s0, %s680_s13  ;;  %s24_s10 = int_to_ptr.vmem [resolvable:$true] %s23_s10 }
   0x5   :  { %p684_p1 = scmp.lt.u32.totalorder %s680_s13, %s808_s0 }
   0x7   :  { %p686_p2 = pnand %p684_p1, %p681_p0 }
   0x9   :  { %689 = shalt.err (!%p686_p2)
}
   0xa   :  { %s690_s18 = scalar_lea.vmem %s24_s10, 256  ;;  %s694_s19 = scalar_lea.vmem %s24_s10, 8192 }
   0xb   :  { %p691_p3 = scmp.ne.s32.totalorder %s24_s10, %s690_s18  ;;  %p695_p4 = scmp.lt.s32.totalorder %s24_s10, %s24_s10 }
   0xc   :  { %p696_p5 = scmp.lt.s32.totalorder %s694_s19, %s690_s18 }
   0xe   :  { %p697_p6 = por %p696_p5, %p695_p4 }
  0x10   :  { %p698_p7 = pnand %p697_p6, %p691_p3 }
  0x12   :  { %701 = shalt.err (!%p698_p7)
}
  0x13   :  { %s753_s20 = smov 128   ;;  %s754_s21 = smov 8  }
  0x14   :  { %29 = dma.hbm_to_vmem [thread:$0]  %s808_s0, 256, %s24_s10, [#allocation4], %s753_s20, %s753_s20, %s754_s21  }
  0x15   :  { %38 = vsyncadd [#allocation7], 7936  ;;  %s755_s24 = smov [#allocation6]   ;;  %s702_s28 = scalar_lea.hbm %s809_s1, 256 }
  0x16   :  { %s43_s25 = sshll.u32 %s755_s24, 4  ;;  %p703_p8 = scmp.ne.s32.totalorder %s809_s1, %s702_s28  ;;  %s44_s25 = int_to_ptr.vmem [resolvable:$true] %s43_s25 }
  0x17   :  { %p706_p9 = scmp.lt.u32.totalorder %s702_s28, %s809_s1 }
  0x19   :  { %p708_p10 = pnand %p706_p9, %p703_p8 }
  0x1b   :  { %711 = shalt.err (!%p708_p10)
}
  0x1c   :  { %s712_s5 = scalar_lea.vmem %s44_s25, 256  ;;  %s716_s0 = scalar_lea.vmem %s44_s25, 8192 }
  0x1d   :  { %p713_p11 = scmp.ne.s32.totalorder %s44_s25, %s712_s5  ;;  %p717_p12 = scmp.lt.s32.totalorder %s44_s25, %s44_s25 }
  0x1e   :  { %p718_p13 = scmp.lt.s32.totalorder %s716_s0, %s712_s5 }
  0x20   :  { %p719_p0 = por %p718_p13, %p717_p12 }
  0x22   :  { %p720_p1 = pnand %p719_p0, %p713_p11 }
  0x24   :  { %723 = shalt.err (!%p720_p1)
}
  0x25   :  { %49 = dma.hbm_to_vmem [thread:$0]  %s809_s1, 256, %s44_s25, [#allocation7], %s753_s20, %s753_s20, %s754_s21  }
  0x26   :  { %746 = dma.done.wait [#allocation4], 8192  }
  0x27   :  { %747 = vsyncadd [#allocation4], 4294959104 }
  0x28   :  { %748 = dma.done.wait [#allocation7], 8192  }
  0x29   :  { %749 = vsyncadd [#allocation7], 4294959104  ;;  %v72_v0 = vld [vmem:[#allocation3] sm:$0xff]  ;;  %v73_v1 = vld [vmem:[#allocation3 + $0x8] sm:$0xff]  ;;  %s756_s8 = smov [#allocation8]  }
  0x2a   :  { %v136_v2 = vld [vmem:[#allocation6] sm:$0xff]  ;;  %v137_v3 = vld [vmem:[#allocation6 + $0x8] sm:$0xff]  ;;  %s665_s9 = sshll.u32 %s756_s8, 4  ;;  %s666_s9 = int_to_ptr.vmem [resolvable:$true] %s665_s9 }
  0x2b   :  { %v200_v4 = vsub.f32 %v72_v0, %v136_v2  ;;  %v201_v5 = vsub.f32 %v73_v1, %v137_v3  ;;  %s724_s10 = scalar_lea.vmem %s666_s9, 128  ;;  %p729_p3 = scmp.lt.s32.totalorder %s666_s9, %s666_s9 }
  0x2c   :  { %p725_p2 = scmp.ne.s32.totalorder %s666_s9, %s724_s10  ;;  %p730_p4 = scmp.lt.s32.totalorder %s724_s10, %s724_s10 }
  0x2d   :  { %v264_v6 = vand.u32 2147483647, %v200_v4  ;;  %v265_v7 = vand.u32 2147483647, %v201_v5 }
  0x2e   :  { %p731_p5 = por %p730_p4, %p729_p3 }
  0x2f   :  { %v588_v8 = vadd.f32 %v265_v7, %v264_v6 }
  0x30   :  { %p732_p6 = pnand %p731_p5, %p725_p2 }
  0x31   :  { %v657_v9 = vmul.f32 0.00048828125, %v588_v8 }
  0x33   :  { %658 = vst [vmem:[#allocation8] sm:$0xff] %v657_v9 }
  0x34   :  { %735 = shalt.err (!%p732_p6)
}
  0x35   :  { %s736_s12 = scalar_lea.hbm %s810_s2, 128 }
  0x36   :  { %p737_p7 = scmp.ne.s32.totalorder %s810_s2, %s736_s12  ;;  %p740_p8 = scmp.lt.u32.totalorder %s736_s12, %s810_s2 }
  0x38   :  { %p742_p9 = pnand %p740_p8, %p737_p7 }
  0x3a   :  { %745 = shalt.err (!%p742_p9)
}
  0x3b   :  { %668 = dma.vmem_to_hbm [thread:$0]  %s666_s9, 128, %s810_s2, [#allocation5]  }
  0x3c   :  { %750 = dma.done.wait [#allocation5], 128  }
  0x3d   :  { %751 = vsyncadd [#allocation5], 4294967168 }
  0x3e   :  { %672 = vsyncpa [#allocation4], 1 }
  0x3f   :  { %673 = vsyncpa [#allocation7], 1 }
  0x40   :  { %674 = vsyncpa [#allocation5], 1 }

</bundles_post_ra>
